<compile_context>
chip_gen: v5e
topology: v5e:2x2
jax: 0.10.0
libtpu: 0.0.40
codegen_flags: <defaults>
</compile_context>

<pallas_src>
import functools

import jax
import jax.numpy as jnp
from jax import lax
from jax.experimental import pallas as pl
from jax.experimental.pallas import tpu as pltpu

_LANES = 128


def _sublane_multiple(dtype) -> int:
    """Second-minor tile granularity for a given HBM dtype (f32:8 bf16:16 i8:32)."""
    return {4: 8, 2: 16, 1: 32}.get(jnp.dtype(dtype).itemsize, 8)


def _dice_kernel(x_ref, t_ref, o_ref, acc_i_ref, acc_d_ref, *,
                 rows_valid, row_tile, tiles_per_core, acc_rows, mask_possible):
    """Grid: (core, row_tile_within_core). Axis 1 is the reduction axis."""
    c = pl.program_id(0)
    i = pl.program_id(1)

    @pl.when(i == 0)
    def _init():
        acc_i_ref[...] = jnp.zeros_like(acc_i_ref)
        acc_d_ref[...] = jnp.zeros_like(acc_d_ref)

    def _accumulate(masked):
        x = x_ref[...].astype(jnp.float32)
        t = t_ref[...].astype(jnp.float32)
        # sigmoid(x) == 0.5 * (tanh(x/2) + 1): single EUP push per vreg.
        s = 0.5 * (jnp.tanh(0.5 * x) + 1.0)
        if masked:
            row_start = (c * tiles_per_core + i) * row_tile
            rid = row_start + lax.broadcasted_iota(jnp.int32, x.shape, 0)
            valid = rid < rows_valid
            s = jnp.where(valid, s, 0.0)
            t = jnp.where(valid, t, 0.0)
        prod = s * t
        den = s + t
        # Fold sub-chunks before touching the (small) accumulators: pure VPU
        # adds, accumulator VMEM traffic reduced by row_tile / acc_rows.
        acc_i_ref[...] += prod.reshape(-1, acc_rows, _LANES).sum(axis=0)
        acc_d_ref[...] += den.reshape(-1, acc_rows, _LANES).sum(axis=0)

    if mask_possible:
        row_start = (c * tiles_per_core + i) * row_tile
        # Steady-state tiles take the unmasked path; only trailing (partial or
        # fully padded) tiles pay for the iota + selects.
        pl.when(row_start + row_tile <= rows_valid)(lambda: _accumulate(False))
        pl.when(row_start + row_tile > rows_valid)(lambda: _accumulate(True))
    else:
        _accumulate(False)

    @pl.when(i == pl.num_programs(1) - 1)
    def _finalize():
        o_ref[0, 0] = jnp.sum(acc_i_ref[...])
        o_ref[0, 1] = jnp.sum(acc_d_ref[...])


def dice_coef(inputs, targets, smooth=1.0, *, row_tile=4096, acc_rows=512,
              num_cores=2):
    """Pallas implementation of DiceCoef.forward."""
    x = jnp.ravel(inputs)
    t = jnp.ravel(targets)
    n = x.shape[0]

    sub = max(_sublane_multiple(x.dtype), _sublane_multiple(t.dtype))
    rows = n // _LANES
    n_bulk = rows * _LANES

    inter = jnp.float32(0.0)
    den = jnp.float32(0.0)
    tail_start = 0

    if rows >= sub:
        # Row tile: multiple of the packed sublane granularity and of the
        # accumulator row count, never larger than the bulk row count.
        rt = min(int(row_tile), (rows // sub) * sub)
        rt = max(sub, (rt // sub) * sub)
        acc_r = min(int(acc_rows), rt)
        acc_r = max(sub, (acc_r // sub) * sub)
        rt = max(acc_r, (rt // acc_r) * acc_r)

        total_tiles = pl.cdiv(rows, rt)
        n_cores = num_cores if total_tiles >= num_cores else 1
        tiles_per_core = pl.cdiv(total_tiles, n_cores)
        mask_possible = (n_cores * tiles_per_core * rt) != rows
        last_tile = total_tiles - 1

        if n_bulk == n:
            # Lane-aligned: full ravel reshapes for free, no slice copy.
            x2 = x.reshape(rows, _LANES)
            t2 = t.reshape(rows, _LANES)
            fuse = None
        else:
            # Ragged: let XLA fuse the slice+reshape into the pallas_call so
            # the bulk is not re-materialized in HBM before the kernel.
            x2 = x[:n_bulk].reshape(rows, _LANES)
            t2 = t[:n_bulk].reshape(rows, _LANES)
            fuse = [True, True]

        def in_map(c, i):
            # Clamp so a fully padded tile (odd tile count split across cores)
            # re-reads the last real tile; the in-kernel mask zeroes it.
            return (jnp.minimum(c * tiles_per_core + i, last_tile), 0)

        kernel = functools.partial(
            _dice_kernel,
            rows_valid=rows, row_tile=rt, tiles_per_core=tiles_per_core,
            acc_rows=acc_r, mask_possible=mask_possible)

        out = pl.pallas_call(
            kernel,
            out_shape=jax.ShapeDtypeStruct((n_cores, 2), jnp.float32),
            grid_spec=pltpu.PrefetchScalarGridSpec(
                num_scalar_prefetch=0,
                grid=(n_cores, tiles_per_core),
                in_specs=[
                    pl.BlockSpec((rt, _LANES), in_map),
                    pl.BlockSpec((rt, _LANES), in_map),
                ],
                out_specs=pl.BlockSpec(
                    (1, 2), lambda c, i: (c, 0),
                    memory_space=pltpu.MemorySpace.SMEM),
                scratch_shapes=[
                    pltpu.VMEM((acc_r, _LANES), jnp.float32),
                    pltpu.VMEM((acc_r, _LANES), jnp.float32),
                ],
            ),
            compiler_params=pltpu.CompilerParams(
                dimension_semantics=("parallel", "arbitrary"),
                allow_input_fusion=fuse,
            ),
        )(x2, t2)

        inter = inter + jnp.sum(out[:, 0])
        den = den + jnp.sum(out[:, 1])
        tail_start = n_bulk

    if tail_start < n:
        # Lane remainder (< 128 elements, or the whole tiny input): plain jnp.
        xt = x[tail_start:].astype(jnp.float32)
        tt = t[tail_start:].astype(jnp.float32)
        st = jax.nn.sigmoid(xt)
        inter = inter + jnp.sum(st * tt)
        den = den + jnp.sum(st) + jnp.sum(tt)

    return (2.0 * inter + smooth) / (den + smooth)


def _dice_ref(inputs, targets, smooth=1.0):
    s = jax.nn.sigmoid(inputs.astype(jnp.float32)).ravel()
    t = targets.astype(jnp.float32).ravel()
    inter = jnp.sum(s * t)
    return (2.0 * inter + smooth) / (jnp.sum(s) + jnp.sum(t) + smooth)


if __name__ == "__main__":
    key = jax.random.PRNGKey(0)
    k1, k2, k3, k4 = jax.random.split(key, 4)

    # Primary case: NCHW-like, batch=2, channels=4, spatial=16x16 (n = 2048).
    x = jax.random.normal(k1, (2, 4, 16, 16), dtype=jnp.float32)
    tgt = (jax.random.uniform(k2, (2, 4, 16, 16)) > 0.5).astype(jnp.float32)

    dice = dice_coef(x, tgt)
    jax.block_until_ready(dice)
    ref = _dice_ref(x, tgt)
    assert jnp.allclose(dice, ref, rtol=1e-4, atol=1e-4), (dice, ref)

    # Ragged case: exercises the 2-core split, trailing-tile mask, ragged slice
    # fusion, and the lane-remainder path.
    x2 = jax.random.normal(k3, (3, 5, 7, 11), dtype=jnp.float32)
    t2 = (jax.random.uniform(k4, (3, 5, 7, 11)) > 0.5).astype(jnp.float32)
    dice2 = dice_coef(x2, t2)
    jax.block_until_ready(dice2)
    ref2 = _dice_ref(x2, t2)
    assert jnp.allclose(dice2, ref2, rtol=1e-4, atol=1e-4), (dice2, ref2)

    print("KERNEL_OK")
</pallas_src>

<mosaic_0001>
module attributes {stable_mosaic.version = 11 : i64} {
  func.func @_dice_kernel(%arg0: i32, %arg1: i32, %arg2: memref<16x128xf32, #tpu.memory_space<vmem>>, %arg3: memref<16x128xf32, #tpu.memory_space<vmem>>, %arg4: memref<1x2xf32, #tpu.memory_space<smem>>, %arg5: memref<16x128xf32, #tpu.memory_space<vmem>>, %arg6: memref<16x128xf32, #tpu.memory_space<vmem>>) attributes {dimension_semantics = [#tpu.dimension_semantics<parallel>, #tpu.dimension_semantics<arbitrary>], iteration_bounds = array<i64: 1, 1>, scalar_prefetch = 0 : i64, scratch_operands = 2 : i64, tpu.core_type = #tpu.core_type<tc>, window_params = [{transform_indices = @transform_0, window_bounds = array<i64: 16, 128>}, {transform_indices = @transform_1, window_bounds = array<i64: 16, 128>}, {transform_indices = @transform_2, window_bounds = array<i64: 1, 2>}]} {
    %c0_i32 = arith.constant 0 : i32
    %0 = arith.cmpi eq, %arg1, %c0_i32 : i32
    %1 = arith.extui %0 : i1 to i32
    %c0_i32_0 = arith.constant 0 : i32
    %2 = arith.cmpi ne, %1, %c0_i32_0 : i32
    scf.if %2 {
      %cst_18 = arith.constant 0.000000e+00 : f32
      %27 = vector.broadcast %cst_18 : f32 to vector<16x128xf32>
      %c0_19 = arith.constant 0 : index
      %c0_20 = arith.constant 0 : index
      %28 = vector.load %arg5[%c0_19, %c0_20] : memref<16x128xf32, #tpu.memory_space<vmem>>, vector<16x128xf32>
      tpu.vector_store %arg5[%c0_19, %c0_20], %27 {strides = array<i32>} : memref<16x128xf32, #tpu.memory_space<vmem>>, vector<16x128xf32>,
      %cst_21 = arith.constant 0.000000e+00 : f32
      %29 = vector.broadcast %cst_21 : f32 to vector<16x128xf32>
      %c0_22 = arith.constant 0 : index
      %c0_23 = arith.constant 0 : index
      %30 = vector.load %arg6[%c0_22, %c0_23] : memref<16x128xf32, #tpu.memory_space<vmem>>, vector<16x128xf32>
      tpu.vector_store %arg6[%c0_22, %c0_23], %29 {strides = array<i32>} : memref<16x128xf32, #tpu.memory_space<vmem>>, vector<16x128xf32>,
    } else {
    }
    %c0 = arith.constant 0 : index
    %c0_1 = arith.constant 0 : index
    %3 = vector.load %arg2[%c0, %c0_1] : memref<16x128xf32, #tpu.memory_space<vmem>>, vector<16x128xf32>
    %c0_2 = arith.constant 0 : index
    %c0_3 = arith.constant 0 : index
    %4 = vector.load %arg3[%c0_2, %c0_3] : memref<16x128xf32, #tpu.memory_space<vmem>>, vector<16x128xf32>
    %cst = arith.constant 5.000000e-01 : f32
    %5 = vector.broadcast %cst : f32 to vector<16x128xf32>
    %6 = arith.mulf %5, %3 : vector<16x128xf32>
    %7 = math.tanh %6 : vector<16x128xf32>
    %cst_4 = arith.constant 1.000000e+00 : f32
    %8 = vector.broadcast %cst_4 : f32 to vector<16x128xf32>
    %9 = arith.addf %7, %8 : vector<16x128xf32>
    %cst_5 = arith.constant 5.000000e-01 : f32
    %10 = vector.broadcast %cst_5 : f32 to vector<16x128xf32>
    %11 = arith.mulf %10, %9 : vector<16x128xf32>
    %12 = arith.mulf %11, %4 : vector<16x128xf32>
    %13 = arith.addf %11, %4 : vector<16x128xf32>
    %c0_6 = arith.constant 0 : index
    %c0_7 = arith.constant 0 : index
    %14 = vector.load %arg5[%c0_6, %c0_7] : memref<16x128xf32, #tpu.memory_space<vmem>>, vector<16x128xf32>
    %15 = vector.shape_cast %12 : vector<16x128xf32> to vector<1x16x128xf32>
    %cst_8 = arith.constant dense<0.000000e+00> : vector<16x128xf32>
    %16 = vector.multi_reduction <add>, %15, %cst_8 [0] : vector<1x16x128xf32> to vector<16x128xf32>
    %17 = arith.addf %14, %16 : vector<16x128xf32>
    %c0_9 = arith.constant 0 : index
    %c0_10 = arith.constant 0 : index
    %18 = vector.load %arg5[%c0_9, %c0_10] : memref<16x128xf32, #tpu.memory_space<vmem>>, vector<16x128xf32>
    tpu.vector_store %arg5[%c0_9, %c0_10], %17 {strides = array<i32>} : memref<16x128xf32, #tpu.memory_space<vmem>>, vector<16x128xf32>,
    %c0_11 = arith.constant 0 : index
    %c0_12 = arith.constant 0 : index
    %19 = vector.load %arg6[%c0_11, %c0_12] : memref<16x128xf32, #tpu.memory_space<vmem>>, vector<16x128xf32>
    %20 = vector.shape_cast %13 : vector<16x128xf32> to vector<1x16x128xf32>
    %cst_13 = arith.constant dense<0.000000e+00> : vector<16x128xf32>
    %21 = vector.multi_reduction <add>, %20, %cst_13 [0] : vector<1x16x128xf32> to vector<16x128xf32>
    %22 = arith.addf %19, %21 : vector<16x128xf32>
    %c0_14 = arith.constant 0 : index
    %c0_15 = arith.constant 0 : index
    %23 = vector.load %arg6[%c0_14, %c0_15] : memref<16x128xf32, #tpu.memory_space<vmem>>, vector<16x128xf32>
    tpu.vector_store %arg6[%c0_14, %c0_15], %22 {strides = array<i32>} : memref<16x128xf32, #tpu.memory_space<vmem>>, vector<16x128xf32>,
    %c0_i32_16 = arith.constant 0 : i32
    %24 = arith.cmpi eq, %arg1, %c0_i32_16 : i32
    %25 = arith.extui %24 : i1 to i32
    %c0_i32_17 = arith.constant 0 : i32
    %26 = arith.cmpi ne, %25, %c0_i32_17 : i32
    scf.if %26 {
      %c0_18 = arith.constant 0 : index
      %c0_19 = arith.constant 0 : index
      %27 = vector.load %arg5[%c0_18, %c0_19] : memref<16x128xf32, #tpu.memory_space<vmem>>, vector<16x128xf32>
      %28 = vector.shape_cast %27 : vector<16x128xf32> to vector<1x16x128xf32>
      %cst_20 = arith.constant dense<0.000000e+00> : vector<1xf32>
      %29 = vector.multi_reduction <add>, %28, %cst_20 [1, 2] : vector<1x16x128xf32> to vector<1xf32>
      %30 = vector.shape_cast %29 : vector<1xf32> to vector<1x1x1xf32>
      %31 = vector.extract %30[0, 0, 0] : f32 from vector<1x1x1xf32>
      %c0_21 = arith.constant 0 : index
      %c0_22 = arith.constant 0 : index
      %32 = memref.load %arg4[%c0_21, %c0_22] : memref<1x2xf32, #tpu.memory_space<smem>>
      memref.store %31, %arg4[%c0_21, %c0_22] : memref<1x2xf32, #tpu.memory_space<smem>>
      %c0_23 = arith.constant 0 : index
      %c0_24 = arith.constant 0 : index
      %33 = vector.load %arg6[%c0_23, %c0_24] : memref<16x128xf32, #tpu.memory_space<vmem>>, vector<16x128xf32>
      %34 = vector.shape_cast %33 : vector<16x128xf32> to vector<1x16x128xf32>
      %cst_25 = arith.constant dense<0.000000e+00> : vector<1xf32>
      %35 = vector.multi_reduction <add>, %34, %cst_25 [1, 2] : vector<1x16x128xf32> to vector<1xf32>
      %36 = vector.shape_cast %35 : vector<1xf32> to vector<1x1x1xf32>
      %37 = vector.extract %36[0, 0, 0] : f32 from vector<1x1x1xf32>
      %c0_26 = arith.constant 0 : index
      %c1 = arith.constant 1 : index
      %38 = memref.load %arg4[%c0_26, %c1] : memref<1x2xf32, #tpu.memory_space<smem>>
      memref.store %37, %arg4[%c0_26, %c1] : memref<1x2xf32, #tpu.memory_space<smem>>
    } else {
    }
    return
  }
  func.func @transform_0(%arg0: i32, %arg1: i32) -> (i32, i32) {
    %c1_i32 = arith.constant 1 : i32
    %0 = arith.muli %arg0, %c1_i32 : i32
    %1 = arith.addi %0, %arg1 : i32
    %c0_i32 = arith.constant 0 : i32
    %2 = arith.minsi %1, %c0_i32 : i32
    %c0_i32_0 = arith.constant 0 : i32
    %c0_i32_1 = arith.constant 0 : i32
    return %2, %c0_i32_0 : i32, i32
  }
  func.func @transform_1(%arg0: i32, %arg1: i32) -> (i32, i32) {
    %c1_i32 = arith.constant 1 : i32
    %0 = arith.muli %arg0, %c1_i32 : i32
    %1 = arith.addi %0, %arg1 : i32
    %c0_i32 = arith.constant 0 : i32
    %2 = arith.minsi %1, %c0_i32 : i32
    %c0_i32_0 = arith.constant 0 : i32
    %c0_i32_1 = arith.constant 0 : i32
    return %2, %c0_i32_0 : i32, i32
  }
  func.func @transform_2(%arg0: i32, %arg1: i32) -> (i32, i32) {
    %c0_i32 = arith.constant 0 : i32
    %c0_i32_0 = arith.constant 0 : i32
    return %arg0, %c0_i32 : i32, i32
  }
}

</mosaic_0001>

<bundles_post_ra>
// kernel: tpu_custom_call.1
= control target key start
LH: loop header
LB: loop body
LE: loop exit
PB: predicated region body
PF: predicated region fallthrough
CT: control target
= control target key end

     0   :  { %7 = vsyncpa [#allocation5], 0  ;;  %s264_s0 = inlined_call_operand.hbm [shape: f32[16,128], index: 0, kind: input, shape index: {}]   ;;  %s265_s1 = inlined_call_operand.hbm [shape: f32[16,128], index: 1, kind: input, shape index: {}]   ;;  %s266_s2 = inlined_call_operand.hbm [shape: f32[1,2], index: 2, kind: output, shape index: {}]  }
   0x1   :  { %8 = vsyncpa [#allocation8], 0 }
   0x2   :  { %9 = vsyncpa [#allocation6], 0  ;;  %s20_s11 = sshll.u32 %s264_s0, 4  ;;  %s235_s12 = smov [#allocation4]   ;;  %s21_s11 = int_to_ptr.hbm [resolvable:$true] %s20_s11 }
   0x3   :  { %s22_s13 = sshll.u32 %s235_s12, 4  ;;  %s39_s16 = sshll.u32 %s265_s1, 4  ;;  %s23_s13 = int_to_ptr.vmem [resolvable:$true] %s22_s13  ;;  %s40_s16 = int_to_ptr.hbm [resolvable:$true] %s39_s16 }
   0x4   :  { %s236_s17 = smov 128   ;;  %s237_s18 = smov 8  }
   0x5   :  { %28 = dma.hbm_to_vmem [thread:$0]  %s21_s11, 256, %s23_s13, [#allocation5], %s236_s17, %s236_s17, %s237_s18  }
   0x6   :  { %s238_s19 = smov [#allocation7]  }
   0x7   :  { %s41_s20 = sshll.u32 %s238_s19, 4  ;;  %s42_s20 = int_to_ptr.vmem [resolvable:$true] %s41_s20 }
   0x8   :  { %47 = dma.hbm_to_vmem [thread:$0]  %s40_s16, 256, %s42_s20, [#allocation8], %s236_s17, %s236_s17, %s237_s18  }
   0x9   :  { %229 = dma.done.wait [#allocation5], 256  }
   0xa   :  { %230 = vsyncadd [#allocation5], 4294967040 }
   0xb   :  { %231 = dma.done.wait [#allocation8], 256  }
   0xc   :  { %232 = vsyncadd [#allocation8], 4294967040  ;;  %v72_v0 = vld [vmem:[#allocation4] sm:$0xff]  ;;  %v73_v1 = vld [vmem:[#allocation4 + $0x8] sm:$0xff]  ;;  %s140_s22 = sshll.u32 %s266_s2, 4  ;;  %s239_s24 = smov [#allocation9]   ;;  %s141_s22 = int_to_ptr.hbm [resolvable:$true] %s140_s22 }
   0xd   :  { %v76_v2 = vmul.f32 0.5, %v72_v0  ;;  %v77_v3 = vmul.f32 0.5, %v73_v1  ;;  %v74_v7 = vld [vmem:[#allocation7] sm:$0xff]  ;;  %v75_v9 = vld [vmem:[#allocation7 + $0x8] sm:$0xff] }
   0xf   :  { %165 = vtanh.f32 %v76_v2 }
  0x10   :  { %167 = vtanh.f32 %v77_v3 }
  0x15   :  { %v166_v4 = vpop.eup %165 }
  0x16   :  { %v168_v5 = vpop.eup %167  ;;  %v80_v6 = vadd.f32 1.0, %v166_v4 }
  0x17   :  { %v81_v8 = vadd.f32 1.0, %v168_v5 }
  0x18   :  { %v82_v10 = vmul.f32 0.5, %v80_v6 }
  0x19   :  { %v83_v11 = vmul.f32 0.5, %v81_v8 }
  0x1a   :  { %v84_v12 = vmul.f32 %v82_v10, %v74_v7  ;;  %v86_v15 = vadd.f32 %v82_v10, %v74_v7 }
  0x1b   :  { %v85_v13 = vmul.f32 %v83_v11, %v75_v9  ;;  %v87_v16 = vadd.f32 %v83_v11, %v75_v9 }
  0x1d   :  { %v109_v14 = vadd.f32 %v85_v13, %v84_v12  ;;  %v123_v17 = vadd.f32 %v87_v16, %v86_v15 }
  0x1f   :  { %110 = vadd.xlane.f32.xlu0 %v109_v14 }
  0x27   :  { %124 = vadd.xlane.f32.xlu0 %v123_v17 }
  0x92   :  { %v111_v18 = vpop.xlane.xlu0 %110 }
  0x93   :  { %v112_v19 = vrot.slane %v111_v18, 4 }
  0x95   :  { %v113_v20 = vadd.f32 %v112_v19, %v111_v18 }
  0x97   :  { %v114_v21 = vrot.slane %v113_v20, 2 }
  0x99   :  { %v115_v22 = vadd.f32 %v114_v21, %v113_v20 }
  0x9a   :  { %v125_v23 = vpop.xlane.xlu0 %124 }
  0x9b   :  { %v126_v24 = vrot.slane %v125_v23, 4  ;;  %v116_v25 = vrot.slane %v115_v22, 1 }
  0x9d   :  { %v127_v26 = vadd.f32 %v126_v24, %v125_v23  ;;  %v117_v27 = vadd.f32 %v116_v25, %v115_v22 }
  0x9f   :  { %v128_v28 = vrot.slane %v127_v26, 2  ;;  %156 = vpush %v117_v27 }
  0xa1   :  { %v129_v29 = vadd.f32 %v128_v28, %v127_v26 }
  0xa3   :  { %v130_v30 = vrot.slane %v129_v29, 1 }
  0xa5   :  { %v131_v31 = vadd.f32 %v130_v30, %v129_v29 }
  0xa7   :  { %158 = vpush %v131_v31 }
  0xd0   :  { %s157_s0 = spop %156 }
  0xd1   :  { %120 = sst [smem:[#allocation9]] %s157_s0 }
  0xd8   :  { %s159_s23 = spop %158 }
  0xd9   :  { %134 = sst [smem:[#allocation9 + $0x1]] %s159_s23 }
  0xda   :  { %143 = dma.smem_to_hbm %s239_s24, 16, %s141_s22, [#allocation6]  }
  0xdb   :  { %233 = dma.done.wait [#allocation6], 16  }
  0xdc   :  { %234 = vsyncadd [#allocation6], 4294967280 }
  0xdd   :  { %148 = sfence }
  0xde   :  { %149 = vsyncpa [#allocation5], 1 }
  0xdf   :  { %150 = vsyncpa [#allocation8], 1 }
  0xe0   :  { %151 = vsyncpa [#allocation6], 1 }

</bundles_post_ra>
